<compile_context>
chip_gen: v7x
topology: tpu7x:2x2x1
jax: 0.10.0
libtpu: 0.0.40
codegen_flags: <defaults>
</compile_context>

<pallas_src>
import jax
import jax.numpy as jnp
from jax.experimental import pallas as pl
from jax.experimental.pallas import tpu as pltpu

_LANE = 128
_SUBLANE = 8


def _round_up(n, m):
    return ((n + m - 1) // m) * m


def _mlp_kernel(x_ref, w1_ref, b1_ref, w2_ref, b2_ref, w3_ref, b3_ref,
                o_ref, acc_ref):
    """Fused MLP with a K-split fc1: acc += x_k @ W1_k, then on the last K
    step: relu(+b1) -> relu(@W2+b2) -> @W3+b3 -> bf16 store.

    x arrives in f32 straight from HBM and is cast to bf16 only at the MXU
    boundary; accumulation, bias adds and ReLU stay f32 (v5e VPU has no bf16
    ALU path)."""
    k = pl.program_id(1)

    @pl.when(k == 0)
    def _():
        acc_ref[...] = jnp.zeros_like(acc_ref)

    x = x_ref[...].astype(w1_ref.dtype)
    acc_ref[...] += jnp.dot(x, w1_ref[...], preferred_element_type=jnp.float32)

    @pl.when(k == pl.num_programs(1) - 1)
    def _():
        h1 = jnp.maximum(acc_ref[...] + b1_ref[...], 0.0)
        # dropout (p=0.3) is identity in eval mode
        h2 = jnp.dot(h1.astype(w2_ref.dtype), w2_ref[...],
                     preferred_element_type=jnp.float32) + b2_ref[...]
        h2 = jnp.maximum(h2, 0.0)
        out = jnp.dot(h2.astype(w3_ref.dtype), w3_ref[...],
                      preferred_element_type=jnp.float32) + b3_ref[...]
        o_ref[...] = out.astype(o_ref.dtype)


def _single_buffered(shape, index_map):
    """BlockSpec for a block whose index map is constant: it is fetched once,
    so the second pipeline buffer is pure VMEM waste -> single-buffer it."""
    if hasattr(pl, "Buffered"):
        try:
            return pl.BlockSpec(shape, index_map, pipeline_mode=pl.Buffered(1))
        except Exception:  # older jax without pipeline_mode kwarg
            pass
    return pl.BlockSpec(shape, index_map)


def _pick_k_tile(d_pad, max_tk):
    """Largest multiple of 128 that divides d_pad and is <= max_tk."""
    if d_pad <= max_tk:
        return d_pad
    m = d_pad // _LANE
    best = 1
    for f in range(1, max_tk // _LANE + 1):
        if m % f == 0:
            best = f
    return best * _LANE


def prepare_params(params, *, time_reduce=1):
    """One-time parameter prep (call once at load time, NOT per forward).

    - transpose nn.Linear (out, in) weights to (in, out)
    - fold AvgPool1d(time_reduce) into fc1 (repeat rows, scale by 1/tr)
    - zero-pad all feature dims to multiples of 128 lanes
    - cast weights to bf16; keep biases f32 as (1, out) rows
    """
    w1 = params["fc1_w"].T  # (d_in, h1)
    w2 = params["fc2_w"].T  # (h1, h2)
    w3 = params["fc3_w"].T  # (h2, out)
    b1, b2, b3 = params["fc1_b"], params["fc2_b"], params["fc3_b"]

    # Fold the average pool into fc1: expand rows by time_reduce, scale 1/tr.
    w1 = jnp.repeat(w1, time_reduce, axis=0) / float(time_reduce)  # (d_in*tr, h1)

    d_raw, h1s = w1.shape
    h2s = w2.shape[1]
    outs = w3.shape[1]
    d_pad = _round_up(d_raw, _LANE)
    h1p = _round_up(h1s, _LANE)
    h2p = _round_up(h2s, _LANE)
    outp = _round_up(outs, _LANE)

    def pad2(a, rows, cols):
        return jnp.pad(a, ((0, rows - a.shape[0]), (0, cols - a.shape[1])))

    return {
        "w1": pad2(w1, d_pad, h1p).astype(jnp.bfloat16),
        "w2": pad2(w2, h1p, h2p).astype(jnp.bfloat16),
        "w3": pad2(w3, h2p, outp).astype(jnp.bfloat16),
        "b1": jnp.pad(b1, (0, h1p - h1s)).astype(jnp.float32)[None, :],
        "b2": jnp.pad(b2, (0, h2p - h2s)).astype(jnp.float32)[None, :],
        "b3": jnp.pad(b3, (0, outp - outs)).astype(jnp.float32)[None, :],
        "out_size": int(outs),
        "d_in_raw": int(d_raw),
        "time_reduce": int(time_reduce),
    }


def audio_mlp_forward(x, prepped, *, tile_b=512, max_k_tile=2048):
    """JAX wrapper reproducing AudioMLP.forward (eval mode).

    x: (B, C, n_mels, T) float32 with C * n_mels * (T // time_reduce) equal to
       fc1's input size. The pooling is already folded into prepped["w1"].
    tile_b: batch tile (v6e can afford 512-1024; drop to 64-128 on v5e if
       d_in is very large and the scoped VMEM limit cannot be raised).
    """
    B, C, n_mels, T = x.shape
    tr = prepped["time_reduce"]
    Tp = T // tr
    # Drop any trailing remainder (AvgPool1d semantics); contiguous reshape.
    x_flat = x[..., : Tp * tr].reshape(B, C * n_mels * Tp * tr)
    if x_flat.dtype != jnp.float32:
        x_flat = x_flat.astype(jnp.float32)

    d_raw = prepped["d_in_raw"]
    assert x_flat.shape[1] == d_raw, (x_flat.shape, d_raw)
    d_pad = prepped["w1"].shape[0]
    h1p = prepped["w1"].shape[1]
    h2p = prepped["w2"].shape[1]
    out_pad = prepped["w3"].shape[1]
    out_size = prepped["out_size"]

    # Pad batch only to a sublane multiple (8) — never to tile_b.
    B_pad = max(_SUBLANE, _round_up(B, _SUBLANE))
    if B_pad != B:
        x_flat = jnp.pad(x_flat, ((0, B_pad - B), (0, 0)))
    # Feature padding only if the raw feature dim is not already lane-aligned.
    if d_pad != d_raw:
        x_flat = jnp.pad(x_flat, ((0, 0), (0, d_pad - d_raw)))

    tb = min(tile_b, B_pad)
    # Ensure >= 2 batch steps when B permits so the "parallel" axis can shard
    # across both TensorCores on v7x.
    if B_pad >= 2 * _SUBLANE and tb >= B_pad:
        tb = _round_up((B_pad + 1) // 2, _SUBLANE)

    tk = _pick_k_tile(d_pad, max_k_tile)
    nb = -(-B_pad // tb)     # partial last batch block handled by Pallas
    nk = d_pad // tk         # tk always divides d_pad

    if nk == 1:
        # fc1 weight fetched once -> VMEM-resident, single-buffered.
        w1_spec = _single_buffered((d_pad, h1p), lambda i, k: (0, 0))
    else:
        # streamed along K; keep default double-buffering to hide the DMA.
        w1_spec = pl.BlockSpec((tk, h1p), lambda i, k: (k, 0))

    in_specs = [
        pl.BlockSpec((tb, tk), lambda i, k: (i, k)),          # x (f32)
        w1_spec,
        _single_buffered((1, h1p), lambda i, k: (0, 0)),      # b1
        _single_buffered((h1p, h2p), lambda i, k: (0, 0)),    # w2
        _single_buffered((1, h2p), lambda i, k: (0, 0)),      # b2
        _single_buffered((h2p, out_pad), lambda i, k: (0, 0)),# w3
        _single_buffered((1, out_pad), lambda i, k: (0, 0)),  # b3
    ]
    out_spec = pl.BlockSpec((tb, out_pad), lambda i, k: (i, 0))

    flops = 2 * B_pad * (d_pad * h1p + h1p * h2p + h2p * out_pad)
    bytes_accessed = (
        B_pad * d_pad * 4                                        # x (f32)
        + (d_pad * h1p + h1p * h2p + h2p * out_pad) * 2          # bf16 weights
        + (h1p + h2p + out_pad) * 4                              # f32 biases
        + B_pad * out_pad * 2                                    # bf16 output
    )
    cost = pl.CostEstimate(flops=flops, transcendentals=0,
                           bytes_accessed=bytes_accessed)

    # VMEM working-set estimate; clamp the limit to 64 MiB (safe on every gen).
    w1_bufs = 1 if nk == 1 else 2
    vmem_est = (
        2 * tb * tk * 4                                          # x tile x2 (f32)
        + w1_bufs * tk * h1p * 2                                 # w1 tile(s)
        + (h1p * h2p + h2p * out_pad) * 2                        # w2, w3
        + (h1p + h2p + out_pad) * 4                              # biases
        + 2 * tb * out_pad * 2                                   # out tile x2
        + tb * h1p * 4 + tb * h2p * 4                            # acc + h2 (f32)
    )
    vmem_limit = min(64 * 1024 * 1024,
                     max(32 * 1024 * 1024, int(vmem_est * 3 // 2)))

    out = pl.pallas_call(
        _mlp_kernel,
        out_shape=jax.ShapeDtypeStruct((B_pad, out_pad), jnp.bfloat16),
        grid=(nb, nk),
        in_specs=in_specs,
        out_specs=out_spec,
        scratch_shapes=[pltpu.VMEM((tb, h1p), jnp.float32)],
        compiler_params=pltpu.CompilerParams(
            dimension_semantics=("parallel", "arbitrary"),
            vmem_limit_bytes=vmem_limit,
        ),
        cost_estimate=cost,
    )(
        x_flat,
        prepped["w1"], prepped["b1"],
        prepped["w2"], prepped["b2"],
        prepped["w3"], prepped["b3"],
    )

    # Slice away batch + lane padding; return f32 logits like the PyTorch module.
    return out[:B, :out_size].astype(jnp.float32)


def init_params(key, n_steps, n_mels, hidden1, hidden2, output_size):
    """Deterministic synthetic init mirroring nn.Linear shapes (out, in)."""
    d_in = n_steps * n_mels
    ks = jax.random.split(key, 6)

    def lin(kw, kb, fan_in, fan_out):
        bound = 1.0 / jnp.sqrt(fan_in)
        w = jax.random.uniform(kw, (fan_out, fan_in), jnp.float32, -bound, bound)
        b = jax.random.uniform(kb, (fan_out,), jnp.float32, -bound, bound)
        return w, b

    w1, b1 = lin(ks[0], ks[1], d_in, hidden1)
    w2, b2 = lin(ks[2], ks[3], hidden1, hidden2)
    w3, b3 = lin(ks[4], ks[5], hidden2, output_size)
    return {
        "fc1_w": w1, "fc1_b": b1,
        "fc2_w": w2, "fc2_b": b2,
        "fc3_w": w3, "fc3_b": b3,
    }


def _reference_forward(x, params, *, time_reduce=1):
    """Pure-JAX reference mirroring the PyTorch forward (eval mode), f32."""
    B, C, n_mels, T = x.shape
    Tp = T // time_reduce
    xp = x[..., : Tp * time_reduce].reshape(B, C, n_mels, Tp, time_reduce).mean(-1)
    xf = xp.reshape(B, -1)
    h1 = jnp.maximum(xf @ params["fc1_w"].T + params["fc1_b"], 0.0)
    h2 = jnp.maximum(h1 @ params["fc2_w"].T + params["fc2_b"], 0.0)
    return h2 @ params["fc3_w"].T + params["fc3_b"]


if __name__ == "__main__":
    # Small, module-consistent shapes:
    #   n_mels=8, n_steps=16 (post-pool), time_reduce=2 -> raw time axis = 32
    #   hidden1=32, hidden2=32, output=10, batch=2, channels=1
    B, C, n_mels, n_steps, time_reduce = 2, 1, 8, 16, 2
    hidden1, hidden2, output_size = 32, 32, 10

    key = jax.random.PRNGKey(0)
    kx, kp = jax.random.split(key)
    x = jax.random.normal(kx, (B, C, n_mels, n_steps * time_reduce), jnp.float32)
    params = init_params(kp, n_steps, n_mels, hidden1, hidden2, output_size)

    prepped = prepare_params(params, time_reduce=time_reduce)  # one-time prep
    out = audio_mlp_forward(x, prepped)
    out = jax.block_until_ready(out)

    ref = _reference_forward(x, params, time_reduce=time_reduce)
    assert out.shape == (B, output_size), out.shape
    max_err = float(jnp.max(jnp.abs(out - ref)))
    assert max_err < 5e-2, f"mismatch vs reference: max abs err {max_err}"

    print("KERNEL_OK")
</pallas_src>

<mosaic_0001>
module attributes {stable_mosaic.version = 11 : i64} {
  func.func @_mlp_kernel(%arg0: i32, %arg1: i32, %arg2: memref<8x256xf32, #tpu.memory_space<vmem>>, %arg3: memref<256x128xbf16, #tpu.memory_space<vmem>>, %arg4: memref<1x128xf32, #tpu.memory_space<vmem>>, %arg5: memref<128x128xbf16, #tpu.memory_space<vmem>>, %arg6: memref<1x128xf32, #tpu.memory_space<vmem>>, %arg7: memref<128x128xbf16, #tpu.memory_space<vmem>>, %arg8: memref<1x128xf32, #tpu.memory_space<vmem>>, %arg9: memref<8x128xbf16, #tpu.memory_space<vmem>>, %arg10: memref<8x128xf32, #tpu.memory_space<vmem>>) attributes {dimension_semantics = [#tpu.dimension_semantics<parallel>, #tpu.dimension_semantics<arbitrary>], iteration_bounds = array<i64: 1, 1>, scalar_prefetch = 0 : i64, scratch_operands = 1 : i64, tpu.core_type = #tpu.core_type<tc>, window_params = [{transform_indices = @transform_0, window_bounds = array<i64: 8, 256>}, {pipeline_mode = #tpu.pipeline_mode<synchronous>, transform_indices = @transform_1, window_bounds = array<i64: 256, 128>}, {pipeline_mode = #tpu.pipeline_mode<synchronous>, transform_indices = @transform_2, window_bounds = array<i64: 1, 128>}, {pipeline_mode = #tpu.pipeline_mode<synchronous>, transform_indices = @transform_3, window_bounds = array<i64: 128, 128>}, {pipeline_mode = #tpu.pipeline_mode<synchronous>, transform_indices = @transform_4, window_bounds = array<i64: 1, 128>}, {pipeline_mode = #tpu.pipeline_mode<synchronous>, transform_indices = @transform_5, window_bounds = array<i64: 128, 128>}, {pipeline_mode = #tpu.pipeline_mode<synchronous>, transform_indices = @transform_6, window_bounds = array<i64: 1, 128>}, {transform_indices = @transform_7, window_bounds = array<i64: 8, 128>}]} {
    %c0_i32 = arith.constant 0 : i32
    %0 = arith.cmpi eq, %arg1, %c0_i32 : i32
    %1 = arith.extui %0 : i1 to i32
    %c0_i32_0 = arith.constant 0 : i32
    %2 = arith.cmpi ne, %1, %c0_i32_0 : i32
    scf.if %2 {
      %cst_10 = arith.constant 0.000000e+00 : f32
      %13 = vector.broadcast %cst_10 : f32 to vector<8x128xf32>
      %c0_11 = arith.constant 0 : index
      %c0_12 = arith.constant 0 : index
      %14 = vector.load %arg10[%c0_11, %c0_12] : memref<8x128xf32, #tpu.memory_space<vmem>>, vector<8x128xf32>
      tpu.vector_store %arg10[%c0_11, %c0_12], %13 {strides = array<i32>} : memref<8x128xf32, #tpu.memory_space<vmem>>, vector<8x128xf32>,
    } else {
    }
    %c0 = arith.constant 0 : index
    %c0_1 = arith.constant 0 : index
    %3 = vector.load %arg2[%c0, %c0_1] : memref<8x256xf32, #tpu.memory_space<vmem>>, vector<8x256xf32>
    %4 = arith.truncf %3 : vector<8x256xf32> to vector<8x256xbf16>
    %c0_2 = arith.constant 0 : index
    %c0_3 = arith.constant 0 : index
    %5 = vector.load %arg10[%c0_2, %c0_3] : memref<8x128xf32, #tpu.memory_space<vmem>>, vector<8x128xf32>
    %c0_4 = arith.constant 0 : index
    %c0_5 = arith.constant 0 : index
    %6 = vector.load %arg3[%c0_4, %c0_5] : memref<256x128xbf16, #tpu.memory_space<vmem>>, vector<256x128xbf16>
    %cst = arith.constant dense<0.000000e+00> : vector<8x128xf32>
    %7 = tpu.matmul %4, %6, %cst {dimension_numbers = #tpu.dot_dimension_numbers<[1], [0], [0], [1], [0, 0, 1, 1], [], []>} : vector<8x256xbf16>, vector<256x128xbf16>, vector<8x128xf32> -> vector<8x128xf32>
    %8 = arith.addf %5, %7 : vector<8x128xf32>
    %c0_6 = arith.constant 0 : index
    %c0_7 = arith.constant 0 : index
    %9 = vector.load %arg10[%c0_6, %c0_7] : memref<8x128xf32, #tpu.memory_space<vmem>>, vector<8x128xf32>
    tpu.vector_store %arg10[%c0_6, %c0_7], %8 {strides = array<i32>} : memref<8x128xf32, #tpu.memory_space<vmem>>, vector<8x128xf32>,
    %c0_i32_8 = arith.constant 0 : i32
    %10 = arith.cmpi eq, %arg1, %c0_i32_8 : i32
    %11 = arith.extui %10 : i1 to i32
    %c0_i32_9 = arith.constant 0 : i32
    %12 = arith.cmpi ne, %11, %c0_i32_9 : i32
    scf.if %12 {
      %c0_10 = arith.constant 0 : index
      %c0_11 = arith.constant 0 : index
      %13 = vector.load %arg10[%c0_10, %c0_11] : memref<8x128xf32, #tpu.memory_space<vmem>>, vector<8x128xf32>
      %c0_12 = arith.constant 0 : index
      %c0_13 = arith.constant 0 : index
      %14 = vector.load %arg4[%c0_12, %c0_13] : memref<1x128xf32, #tpu.memory_space<vmem>>, vector<1x128xf32>
      %15 = vector.broadcast %14 : vector<1x128xf32> to vector<8x128xf32>
      %16 = arith.addf %13, %15 : vector<8x128xf32>
      %cst_14 = arith.constant 0.000000e+00 : f32
      %17 = vector.broadcast %cst_14 : f32 to vector<8x128xf32>
      %18 = arith.maximumf %16, %17 : vector<8x128xf32>
      %19 = arith.truncf %18 : vector<8x128xf32> to vector<8x128xbf16>
      %c0_15 = arith.constant 0 : index
      %c0_16 = arith.constant 0 : index
      %20 = vector.load %arg5[%c0_15, %c0_16] : memref<128x128xbf16, #tpu.memory_space<vmem>>, vector<128x128xbf16>
      %cst_17 = arith.constant dense<0.000000e+00> : vector<8x128xf32>
      %21 = tpu.matmul %19, %20, %cst_17 {dimension_numbers = #tpu.dot_dimension_numbers<[1], [0], [0], [1], [0, 0, 1, 1], [], []>} : vector<8x128xbf16>, vector<128x128xbf16>, vector<8x128xf32> -> vector<8x128xf32>
      %c0_18 = arith.constant 0 : index
      %c0_19 = arith.constant 0 : index
      %22 = vector.load %arg6[%c0_18, %c0_19] : memref<1x128xf32, #tpu.memory_space<vmem>>, vector<1x128xf32>
      %23 = vector.broadcast %22 : vector<1x128xf32> to vector<8x128xf32>
      %24 = arith.addf %21, %23 : vector<8x128xf32>
      %cst_20 = arith.constant 0.000000e+00 : f32
      %25 = vector.broadcast %cst_20 : f32 to vector<8x128xf32>
      %26 = arith.maximumf %24, %25 : vector<8x128xf32>
      %27 = arith.truncf %26 : vector<8x128xf32> to vector<8x128xbf16>
      %c0_21 = arith.constant 0 : index
      %c0_22 = arith.constant 0 : index
      %28 = vector.load %arg7[%c0_21, %c0_22] : memref<128x128xbf16, #tpu.memory_space<vmem>>, vector<128x128xbf16>
      %cst_23 = arith.constant dense<0.000000e+00> : vector<8x128xf32>
      %29 = tpu.matmul %27, %28, %cst_23 {dimension_numbers = #tpu.dot_dimension_numbers<[1], [0], [0], [1], [0, 0, 1, 1], [], []>} : vector<8x128xbf16>, vector<128x128xbf16>, vector<8x128xf32> -> vector<8x128xf32>
      %c0_24 = arith.constant 0 : index
      %c0_25 = arith.constant 0 : index
      %30 = vector.load %arg8[%c0_24, %c0_25] : memref<1x128xf32, #tpu.memory_space<vmem>>, vector<1x128xf32>
      %31 = vector.broadcast %30 : vector<1x128xf32> to vector<8x128xf32>
      %32 = arith.addf %29, %31 : vector<8x128xf32>
      %33 = arith.truncf %32 : vector<8x128xf32> to vector<8x128xbf16>
      %c0_26 = arith.constant 0 : index
      %c0_27 = arith.constant 0 : index
      %34 = vector.load %arg9[%c0_26, %c0_27] : memref<8x128xbf16, #tpu.memory_space<vmem>>, vector<8x128xbf16>
      tpu.vector_store %arg9[%c0_26, %c0_27], %33 {strides = array<i32>} : memref<8x128xbf16, #tpu.memory_space<vmem>>, vector<8x128xbf16>,
    } else {
    }
    return
  }
  func.func @transform_0(%arg0: i32, %arg1: i32) -> (i32, i32) {
    %c0_i32 = arith.constant 0 : i32
    return %arg0, %arg1 : i32, i32
  }
  func.func @transform_1(%arg0: i32, %arg1: i32) -> (i32, i32) {
    %c0_i32 = arith.constant 0 : i32
    %c0_i32_0 = arith.constant 0 : i32
    %c0_i32_1 = arith.constant 0 : i32
    return %c0_i32, %c0_i32_0 : i32, i32
  }
  func.func @transform_2(%arg0: i32, %arg1: i32) -> (i32, i32) {
    %c0_i32 = arith.constant 0 : i32
    %c0_i32_0 = arith.constant 0 : i32
    %c0_i32_1 = arith.constant 0 : i32
    return %c0_i32, %c0_i32_0 : i32, i32
  }
  func.func @transform_3(%arg0: i32, %arg1: i32) -> (i32, i32) {
    %c0_i32 = arith.constant 0 : i32
    %c0_i32_0 = arith.constant 0 : i32
    %c0_i32_1 = arith.constant 0 : i32
    return %c0_i32, %c0_i32_0 : i32, i32
  }
  func.func @transform_4(%arg0: i32, %arg1: i32) -> (i32, i32) {
    %c0_i32 = arith.constant 0 : i32
    %c0_i32_0 = arith.constant 0 : i32
    %c0_i32_1 = arith.constant 0 : i32
    return %c0_i32, %c0_i32_0 : i32, i32
  }
  func.func @transform_5(%arg0: i32, %arg1: i32) -> (i32, i32) {
    %c0_i32 = arith.constant 0 : i32
    %c0_i32_0 = arith.constant 0 : i32
    %c0_i32_1 = arith.constant 0 : i32
    return %c0_i32, %c0_i32_0 : i32, i32
  }
  func.func @transform_6(%arg0: i32, %arg1: i32) -> (i32, i32) {
    %c0_i32 = arith.constant 0 : i32
    %c0_i32_0 = arith.constant 0 : i32
    %c0_i32_1 = arith.constant 0 : i32
    return %c0_i32, %c0_i32_0 : i32, i32
  }
  func.func @transform_7(%arg0: i32, %arg1: i32) -> (i32, i32) {
    %c0_i32 = arith.constant 0 : i32
    %c0_i32_0 = arith.constant 0 : i32
    return %arg0, %c0_i32 : i32, i32
  }
}

</mosaic_0001>

<bundles_post_ra>
// kernel: tpu_custom_call.1
= control target key start
LH: loop header
LB: loop body
LE: loop exit
PB: predicated region body
PF: predicated region fallthrough
CT: control target
= control target key end

     0   :  { %12 = vsyncpa [#allocation4], 0  ;;  %s937_s0 = inlined_call_operand.hbm [shape: f32[8,256], index: 0, kind: input, shape index: {}]   ;;  %s938_s1 = inlined_call_operand.hbm [shape: bf16[256,128], index: 1, kind: input, shape index: {}]   ;;  %s939_s2 = inlined_call_operand.vmem [shape: f32[1,128], index: 2, kind: input, shape index: {}]   ;;  %s940_s3 = inlined_call_operand.hbm [shape: bf16[128,128], index: 3, kind: input, shape index: {}]   ;;  %s941_s4 = inlined_call_operand.vmem [shape: f32[1,128], index: 4, kind: input, shape index: {}]   ;;  %s942_s5 = inlined_call_operand.hbm [shape: bf16[128,128], index: 5, kind: input, shape index: {}]   ;;  %s943_s6 = inlined_call_operand.vmem [shape: f32[1,128], index: 6, kind: input, shape index: {}]   ;;  %s944_s7 = inlined_call_operand.hbm [shape: bf16[8,128], index: 7, kind: output, shape index: {}]  }
   0x1   :  { %13 = vsyncpa [#allocation7], 0 }
   0x2   :  { %14 = vsyncpa [#allocation10], 0 }
   0x3   :  { %15 = vsyncpa [#allocation5], 0  ;;  %s792_s24 = smov [#allocation6]   ;;  %s674_s28 = scalar_lea.hbm %s938_s1, 2048 }
   0x4   :  { %s31_s25 = sshll.u32 %s792_s24, 4  ;;  %p675_p0 = scmp.ne.s32.totalorder %s938_s1, %s674_s28  ;;  %s32_s25 = int_to_ptr.vmem [resolvable:$true] %s31_s25 }
   0x5   :  { %p678_p1 = scmp.lt.u32.totalorder %s674_s28, %s938_s1 }
   0x7   :  { %p680_p2 = pnand %p678_p1, %p675_p0 }
   0x9   :  { %683 = shalt.err (!%p680_p2)
}
   0xa   :  { %s684_s10 = scalar_lea.vmem %s32_s25, 2048  ;;  %p689_p4 = scmp.lt.s32.totalorder %s32_s25, %s32_s25 }
   0xb   :  { %p685_p3 = scmp.ne.s32.totalorder %s32_s25, %s684_s10  ;;  %p690_p5 = scmp.lt.s32.totalorder %s684_s10, %s684_s10 }
   0xd   :  { %p691_p6 = por %p690_p5, %p689_p4 }
   0xf   :  { %p692_p7 = pnand %p691_p6, %p685_p3 }
  0x11   :  { %695 = shalt.err (!%p692_p7)
}
  0x12   :  { %s793_s11 = smov 64   ;;  %s794_s12 = smov 4  }
  0x13   :  { %37 = dma.hbm_to_vmem [thread:$0]  %s938_s1, 2048, %s32_s25, [#allocation7], %s793_s11, %s793_s11, %s794_s12  }
  0x14   :  { %s795_s15 = smov [#allocation3]   ;;  %s796_s17 = smov [#allocation8]  }
  0x15   :  { %s22_s16 = sshll.u32 %s795_s15, 4  ;;  %s45_s18 = sshll.u32 %s796_s17, 4  ;;  %s23_s16 = int_to_ptr.vmem [resolvable:$true] %s22_s16  ;;  %s46_s18 = int_to_ptr.vmem [resolvable:$true] %s45_s18 }
  0x16   :  { %s696_s21 = scalar_lea.hbm %s937_s0, 256 }
  0x17   :  { %p697_p8 = scmp.ne.s32.totalorder %s937_s0, %s696_s21  ;;  %p700_p9 = scmp.lt.u32.totalorder %s696_s21, %s937_s0 }
  0x19   :  { %p702_p10 = pnand %p700_p9, %p697_p8 }
  0x1b   :  { %705 = shalt.err (!%p702_p10)
}
  0x1c   :  { %s706_s1 = scalar_lea.vmem %s23_s16, 256  ;;  %p711_p12 = scmp.lt.s32.totalorder %s23_s16, %s23_s16 }
  0x1d   :  { %p707_p11 = scmp.ne.s32.totalorder %s23_s16, %s706_s1  ;;  %p712_p13 = scmp.lt.s32.totalorder %s706_s1, %s706_s1 }
  0x1f   :  { %p713_p0 = por %p712_p13, %p711_p12 }
  0x21   :  { %p714_p1 = pnand %p713_p0, %p707_p11 }
  0x23   :  { %717 = shalt.err (!%p714_p1)
}
  0x24   :  { %25 = dma.hbm_to_vmem [thread:$0]  %s937_s0, 256, %s23_s16, [#allocation4]  }
  0x25   :  { %s718_s30 = scalar_lea.hbm %s940_s3, 1024 }
  0x26   :  { %p719_p2 = scmp.ne.s32.totalorder %s940_s3, %s718_s30  ;;  %p722_p3 = scmp.lt.u32.totalorder %s718_s30, %s940_s3 }
  0x28   :  { %p724_p4 = pnand %p722_p3, %p719_p2 }
  0x2a   :  { %727 = shalt.err (!%p724_p4)
}
  0x2b   :  { %s728_s14 = scalar_lea.vmem %s46_s18, 1024  ;;  %p733_p6 = scmp.lt.s32.totalorder %s46_s18, %s46_s18 }
  0x2c   :  { %p729_p5 = scmp.ne.s32.totalorder %s46_s18, %s728_s14  ;;  %p734_p7 = scmp.lt.s32.totalorder %s728_s14, %s728_s14 }
  0x2e   :  { %p735_p8 = por %p734_p7, %p733_p6 }
  0x30   :  { %p736_p9 = pnand %p735_p8, %p729_p5 }
  0x32   :  { %739 = shalt.err (!%p736_p9)
}
  0x33   :  { %51 = dma.hbm_to_vmem [thread:$0]  %s940_s3, 1024, %s46_s18, [#allocation7], %s793_s11, %s793_s11, %s794_s12  }
  0x34   :  { %s797_s16 = smov [#allocation9]   ;;  %s740_s21 = scalar_lea.hbm %s942_s5, 1024 }
  0x35   :  { %s59_s17 = sshll.u32 %s797_s16, 4  ;;  %p741_p10 = scmp.ne.s32.totalorder %s942_s5, %s740_s21  ;;  %s60_s17 = int_to_ptr.vmem [resolvable:$true] %s59_s17 }
  0x36   :  { %p744_p11 = scmp.lt.u32.totalorder %s740_s21, %s942_s5 }
  0x38   :  { %p746_p12 = pnand %p744_p11, %p741_p10 }
  0x3a   :  { %749 = shalt.err (!%p746_p12)
}
  0x3b   :  { %s750_s1 = scalar_lea.vmem %s60_s17, 1024  ;;  %p755_p0 = scmp.lt.s32.totalorder %s60_s17, %s60_s17 }
  0x3c   :  { %p751_p13 = scmp.ne.s32.totalorder %s60_s17, %s750_s1  ;;  %p756_p1 = scmp.lt.s32.totalorder %s750_s1, %s750_s1 }
  0x3e   :  { %p757_p2 = por %p756_p1, %p755_p0 }
  0x40   :  { %p758_p3 = pnand %p757_p2, %p751_p13 }
  0x42   :  { %761 = shalt.err (!%p758_p3)
}
  0x43   :  { %65 = dma.hbm_to_vmem [thread:$0]  %s942_s5, 1024, %s60_s17, [#allocation10], %s793_s11, %s793_s11, %s794_s12  }
  0x44   :  { %784 = dma.done.wait [#allocation4], 256  }
  0x45   :  { %785 = vsyncadd [#allocation4], 4294967040 }
  0x46   :  { %786 = dma.done.wait [#allocation7], 3072  }
  0x47   :  { %787 = vsyncadd [#allocation7], 4294964224 }
  0x48   :  { %788 = dma.done.wait [#allocation10], 1024  }
  0x49   :  { %789 = vsyncadd [#allocation10], 4294966272  ;;  %v798_v0 = vmov 0.0   ;;  %v642_v1 = vld [vmem:[#allocation6 + $0x40] sm:$0xff]   ;;  %v644_v3 = vld [vmem:[#allocation6 + $0x48] sm:$0xff]   ;;  %vm799_vm0 = vmmov 0  }
  0x4a   :  { %593 = vmatprep.subr.bf16.mxu1 %v798_v0  ;;  %v643_v2 = vld [vmem:[#allocation6] sm:$0xff]   ;;  %553 = vmatprep.subr.bf16.mxu0 %v642_v1  ;;  %v645_v4 = vld [vmem:[#allocation6 + $0x8] sm:$0xff]   ;;  %v646_v5 = vld [vmem:[#allocation6 + $0x50] sm:$0xff]   ;;  %s800_s28 = smov [#allocation11]  }
  0x4b   :  { %554 = vmatpush3.bf16.msra.mxu0 %v643_v2  ;;  %v647_v6 = vld [vmem:[#allocation6 + $0x10] sm:$0xff]   ;;  %v648_v7 = vld [vmem:[#allocation6 + $0x58] sm:$0xff]   ;;  %v650_v9 = vld [vmem:[#allocation6 + $0x60] sm:$0xff]   ;;  %609 = vmatprep.mubr.msk.bf16.mxu1 %vm799_vm0, %v798_v0  ;;  %s507_s29 = sshll.u32 %s800_s28, 4  ;;  %s508_s29 = int_to_ptr.vmem [resolvable:$true] %s507_s29 }
  0x4c   :  { %555 = vmatprep.subr.bf16.mxu0 %v644_v3  ;;  %v649_v8 = vld [vmem:[#allocation6 + $0x18] sm:$0xff]   ;;  %v651_v10 = vld [vmem:[#allocation6 + $0x20] sm:$0xff]   ;;  %v652_v11 = vld [vmem:[#allocation6 + $0x68] sm:$0xff]   ;;  %p767_p5 = scmp.lt.s32.totalorder %s508_s29, %s508_s29 }
  0x4d   :  { %v87_v12 = vld [vmem:[#allocation3 + $0x8] sm:$0xff]  ;;  %v658_v14 = vld [vmem:[#allocation8] sm:$0xff]   ;;  %v653_v15 = vld [vmem:[#allocation6 + $0x28] sm:$0xff]  }
  0x4e   :  { %v89_v13 = vpack.c.bf16 %v87_v12, %v87_v12  ;;  %v654_v16 = vld [vmem:[#allocation6 + $0x70] sm:$0xff]   ;;  %594 = vmatpush3.bf16.msra.mxu1 %v658_v14  ;;  %v659_v17 = vld [vmem:[#allocation8 + $0x8] sm:$0xff]   ;;  %v656_v19 = vld [vmem:[#allocation6 + $0x78] sm:$0xff]  }
  0x4f   :  { %556 = vmatpush3.bf16.msra.mxu0 %v645_v4  ;;  %v655_v18 = vld [vmem:[#allocation6 + $0x30] sm:$0xff]   ;;  %595 = vmatprep.subr.bf16.mxu1 %v798_v0  ;;  %v657_v21 = vld [vmem:[#allocation6 + $0x38] sm:$0xff]   ;;  %v662_v25 = vld [vmem:[#allocation8 + $0x20] sm:$0xff]  }
  0x50   :  { %557 = vmatprep.subr.bf16.mxu0 %v646_v5  ;;  %251 = vmatprep.mubr.bf16.mxu0 %v89_v13  ;;  %v660_v20 = vld [vmem:[#allocation8 + $0x10] sm:$0xff]   ;;  %v661_v23 = vld [vmem:[#allocation8 + $0x18] sm:$0xff]   ;;  %v663_v26 = vld [vmem:[#allocation8 + $0x28] sm:$0xff]  }
  0x51   :  { %v86_v22 = vld [vmem:[#allocation3] sm:$0xff]  ;;  %v665_v28 = vld [vmem:[#allocation8 + $0x38] sm:$0xff]   ;;  %v666_v29 = vld [vmem:[#allocation9] sm:$0xff]  }
  0x52   :  { %596 = vmatpush3.bf16.msra.mxu1 %v659_v17  ;;  %v88_v24 = vpack.c.bf16 %v86_v22, %v86_v22  ;;  %v664_v27 = vld [vmem:[#allocation8 + $0x30] sm:$0xff]   ;;  %v667_v30 = vld [vmem:[#allocation9 + $0x8] sm:$0xff]   ;;  %v669_v32 = vld [vmem:[#allocation9 + $0x18] sm:$0xff]  }
  0x53   :  { %558 = vmatpush3.bf16.msra.mxu0 %v647_v6  ;;  %597 = vmatprep.subr.bf16.mxu1 %v798_v0  ;;  %v668_v31 = vld [vmem:[#allocation9 + $0x10] sm:$0xff]   ;;  %v670_v33 = vld [vmem:[#allocation9 + $0x20] sm:$0xff]   ;;  %v671_v34 = vld [vmem:[#allocation9 + $0x28] sm:$0xff]  }
  0x54   :  { %559 = vmatprep.subr.bf16.mxu0 %v648_v7  ;;  %v534_v37 = vld [vmem:[%s939_s2] ss:$0 sm:$0xff]  ;;  %v673_v45 = vld [vmem:[#allocation9 + $0x38] sm:$0xff]  }
  0x55   :  { %v672_v44 = vld [vmem:[#allocation9 + $0x30] sm:$0xff]  }
  0x56   :  { %598 = vmatpush3.bf16.msra.mxu1 %v660_v20  ;;  %v535_v46 = vld [vmem:[%s941_s4] ss:$0 sm:$0xff]  ;;  %s762_s4 = scalar_lea.vmem %s508_s29, 64 }
  0x57   :  { %560 = vmatpush3.bf16.msra.mxu0 %v649_v8  ;;  %599 = vmatprep.subr.bf16.mxu1 %v798_v0  ;;  %v544_v54 = vld [vmem:[%s943_s6] ss:$0 sm:$0xff]  ;;  %p763_p4 = scmp.ne.s32.totalorder %s508_s29, %s762_s4  ;;  %p768_p6 = scmp.lt.s32.totalorder %s762_s4, %s762_s4 }
  0x58   :  { %561 = vmatprep.subr.bf16.mxu0 %v650_v9 }
  0x59   :  { %p769_p7 = por %p768_p6, %p767_p5 }
  0x5a   :  { %600 = vmatpush3.bf16.msra.mxu1 %v661_v23 }
  0x5b   :  { %562 = vmatpush3.bf16.msra.mxu0 %v651_v10  ;;  %601 = vmatprep.subr.bf16.mxu1 %v798_v0  ;;  %p770_p8 = pnand %p769_p7, %p763_p4 }
  0x5c   :  { %563 = vmatprep.subr.bf16.mxu0 %v652_v11 }
  0x5e   :  { %602 = vmatpush3.bf16.msra.mxu1 %v662_v25 }
  0x5f   :  { %564 = vmatpush3.bf16.msra.mxu0 %v653_v15  ;;  %603 = vmatprep.subr.bf16.mxu1 %v798_v0 }
  0x60   :  { %565 = vmatprep.subr.bf16.mxu0 %v654_v16 }
  0x62   :  { %604 = vmatpush3.bf16.msra.mxu1 %v663_v26 }
  0x63   :  { %566 = vmatpush3.bf16.msra.mxu0 %v655_v18  ;;  %605 = vmatprep.subr.bf16.mxu1 %v798_v0 }
  0x64   :  { %567 = vmatprep.subr.bf16.mxu0 %v656_v19 }
  0x66   :  { %606 = vmatpush3.bf16.msra.mxu1 %v664_v27 }
  0x67   :  { %568 = vmatpush3.bf16.msra.mxu0 %v657_v21  ;;  %607 = vmatprep.subr.bf16.mxu1 %v798_v0 }
  0x68   :  { %613 = vmatprep.subr.bf16.mxu0 %v798_v0 }
  0x6a   :  { %252 = vmatmul.mubr.bf16.vlgmr.msra.gmra.mrb[0].mxu0 %v88_v24  ;;  %608 = vmatpush3.bf16.msra.mxu1 %v665_v28 }
  0x6b   :  { %629 = vmatprep.mubr.msk.bf16.mxu0 %vm799_vm0, %v798_v0  ;;  %614 = vmatpush3.bf16.msra.mxu0 %v666_v29 }
  0x6c   :  { %615 = vmatprep.subr.bf16.mxu0 %v798_v0 }
  0x6f   :  { %616 = vmatpush3.bf16.msra.mxu0 %v667_v30 }
  0x70   :  { %617 = vmatprep.subr.bf16.mxu0 %v798_v0 }
  0x73   :  { %618 = vmatpush3.bf16.msra.mxu0 %v668_v31 }
  0x74   :  { %619 = vmatprep.subr.bf16.mxu0 %v798_v0 }
  0x77   :  { %620 = vmatpush3.bf16.msra.mxu0 %v669_v32 }
  0x78   :  { %621 = vmatprep.subr.bf16.mxu0 %v798_v0 }
  0x7b   :  { %622 = vmatpush3.bf16.msra.mxu0 %v670_v33 }
  0x7c   :  { %623 = vmatprep.subr.bf16.mxu0 %v798_v0 }
  0x7f   :  { %624 = vmatpush3.bf16.msra.mxu0 %v671_v34 }
  0x80   :  { %625 = vmatprep.subr.bf16.mxu0 %v798_v0 }
  0x83   :  { %626 = vmatpush3.bf16.msra.mxu0 %v672_v44 }
  0x84   :  { %627 = vmatprep.subr.bf16.mxu0 %v798_v0 }
  0x87   :  { %628 = vmatpush3.bf16.msra.mxu0 %v673_v45 }
 0x13d   :  { %v569_v35 = vpop.f32.mrb[0].mxu0 }
 0x13e   :  { %v570_v36 = vpop.f32.mrb[1].mxu0 }
 0x13f   :  { %v571_v38 = vadd.f32 %v570_v36, %v569_v35  ;;  %v572_v39 = vpop.f32.mrb[2].mxu0 }
 0x140   :  { %v573_v40 = vpop.f32.mrb[3].mxu0 }
 0x141   :  { %v272_v41 = vadd.f32 %v571_v38, %v534_v37 }
 0x143   :  { %v273_v42 = vmax.f32 %v272_v41, 0.0 }
 0x145   :  { %v274_v43 = vpack.c.bf16 %v273_v42, %v273_v42 }
 0x147   :  { %610 = vmatmul.mubr.bf16.vlgmr.msra.gmra.mrb[0].mxu1 %v274_v43 }
 0x21a   :  { %v380_v47 = vpop.f32.mrb[0].mxu1 }
 0x21b   :  { %v381_v48 = vadd.f32 %v535_v46, %v380_v47  ;;  %v611_v49 = vpop.f32.mrb[1].mxu1 }
 0x21c   :  { %v383_v50 = vpop.f32.mrb[2].mxu1 }
 0x21d   :  { %v386_v51 = vmax.f32 %v381_v48, 0.0  ;;  %v612_v52 = vpop.f32.mrb[3].mxu1 }
 0x21f   :  { %v387_v53 = vpack.c.bf16 %v386_v51, %v386_v51 }
 0x221   :  { %630 = vmatmul.mubr.bf16.vlgmr.msra.gmra.mrb[4].mxu0 %v387_v53 }
 0x2f4   :  { %v493_v55 = vpop.f32.mrb[4].mxu0 }
 0x2f5   :  { %v494_v56 = vadd.f32 %v544_v54, %v493_v55  ;;  %v631_v57 = vpop.f32.mrb[5].mxu0 }
 0x2f6   :  { %v496_v58 = vpop.f32.mrb[6].mxu0 }
 0x2f7   :  { %v499_v59 = vpack.c.bf16 %v494_v56, %v494_v56  ;;  %v632_v60 = vpop.f32.mrb[7].mxu0 }
 0x2f9   :  { %500 = vst [vmem:[#allocation11] sm:$0xf] %v499_v59 }
 0x2fa   :  { %773 = shalt.err (!%p770_p8)
}
 0x2fb   :  { %s774_s6 = scalar_lea.hbm %s944_s7, 64 }
 0x2fc   :  { %p775_p9 = scmp.ne.s32.totalorder %s944_s7, %s774_s6  ;;  %p778_p10 = scmp.lt.u32.totalorder %s774_s6, %s944_s7 }
 0x2fe   :  { %p780_p11 = pnand %p778_p10, %p775_p9 }
 0x300   :  { %783 = shalt.err (!%p780_p11)
}
 0x301   :  { %510 = dma.vmem_to_hbm [thread:$0]  %s508_s29, 64, %s944_s7, [#allocation5]  }
 0x302   :  { %790 = dma.done.wait [#allocation5], 64  }
 0x303   :  { %791 = vsyncadd [#allocation5], 4294967232 }
 0x304   :  { %514 = vsyncpa [#allocation4], 1 }
 0x305   :  { %515 = vsyncpa [#allocation7], 1 }
 0x306   :  { %516 = vsyncpa [#allocation10], 1 }
 0x307   :  { %517 = vsyncpa [#allocation5], 1 }

</bundles_post_ra>
